<compile_context>
chip_gen: v5e
topology: v5e:2x2
jax: 0.10.0
libtpu: 0.0.40
codegen_flags: <defaults>
</compile_context>

<pallas_src>
import functools

import jax
import jax.numpy as jnp
from jax.experimental import pallas as pl
from jax.experimental.pallas import tpu as pltpu

LANE = 128          # lane width: padded hidden / class dimension
NUM_CLASSES = 3
H1, H2 = 64, 32     # logical hidden sizes (padded to LANE inside the kernel math)
TB_TARGET = 2048    # batch-tile target (rows); amortizes per-grid-step overhead


def _round_up(x, m):
    return (x + m - 1) // m * m


def _cdiv(a, b):
    return -(-a // b)


def _choose_tiling(batch):
    """Pick (tile_rows, num_tiles, padded_batch) with bounded padding waste."""
    tiles = max(1, _cdiv(batch, TB_TARGET))
    if tiles > 1 and tiles % 2:
        tiles += 1                      # v7x: keep both TensorCores balanced
    tb = max(8, _round_up(_cdiv(batch, tiles), 8))
    return tb, tiles, tb * tiles


def thyroid_dnn_kernel(x_ref, w1_ref, w2_ref, w3_ref, b_ref, out_ref):
    # x arrives f32; cast to bf16 in-register for the MXU (no wrapper cast pass).
    x = x_ref[...].astype(jnp.bfloat16)              # (TB, D_in)
    b1 = b_ref[0:1, :]                               # (1, 128) f32, padded cols 0
    b2 = b_ref[1:2, :]
    b3 = b_ref[2:3, :]                               # padded class cols hold -1e30

    # fc1 + ReLU  (padded columns: 0*w + 0 bias -> ReLU(0)=0, stays inert)
    h1 = jnp.dot(x, w1_ref[...], preferred_element_type=jnp.float32) + b1
    h1 = jnp.maximum(h1, 0.0).astype(jnp.bfloat16)   # (TB, 128)

    # fc2 + ReLU
    h2 = jnp.dot(h1, w2_ref[...], preferred_element_type=jnp.float32) + b2
    h2 = jnp.maximum(h2, 0.0).astype(jnp.bfloat16)   # (TB, 128)

    # fc3 -> logits; the class mask is baked into b3 (padded lanes = -1e30,
    # so exp underflows to exactly 0 -- no iota/where needed).
    logits = jnp.dot(h2, w3_ref[...], preferred_element_type=jnp.float32) + b3

    # numerically-stable softmax over the class axis (full-lane reduce), exact divide
    m = jnp.max(logits, axis=-1, keepdims=True)
    e = jnp.exp(logits - m)
    denom = jnp.sum(e, axis=-1, keepdims=True)
    out_ref[...] = (e / denom).astype(out_ref.dtype)  # lane-dense bf16 store


def pad_params(w1, b1, w2, b2, w3, b3):
    """Zero-pad weights/biases to 128 lanes; weights -> bf16, biases -> one f32 buffer.

    The padded class entries of b3 are set to -1e30 so the kernel's softmax
    automatically zeros out the non-existent classes.
    """
    d_in = w1.shape[0]
    w1p = jnp.zeros((d_in, LANE), jnp.float32).at[:, :H1].set(w1).astype(jnp.bfloat16)
    w2p = jnp.zeros((LANE, LANE), jnp.float32).at[:H1, :H2].set(w2).astype(jnp.bfloat16)
    w3p = jnp.zeros((LANE, LANE), jnp.float32).at[:H2, :NUM_CLASSES].set(w3).astype(jnp.bfloat16)
    bpad = jnp.zeros((8, LANE), jnp.float32)
    bpad = bpad.at[0, :H1].set(b1)
    bpad = bpad.at[1, :H2].set(b2)
    bpad = bpad.at[2, :].set(-1e30)                   # class mask for padded lanes
    bpad = bpad.at[2, :NUM_CLASSES].set(b3)
    return w1p, w2p, w3p, bpad


def thyroid_dnn_forward(x, padded_params):
    w1p, w2p, w3p, bpad = padded_params
    B, D = x.shape
    x = x.astype(jnp.float32)                         # kernel casts to bf16 itself

    TB, num_tiles, B_pad = _choose_tiling(B)
    if B_pad != B:
        x = jnp.pad(x, ((0, B_pad - B), (0, 0)))

    cost = pl.CostEstimate(
        flops=2 * B_pad * (D * LANE + LANE * LANE + LANE * LANE),
        transcendentals=B_pad * LANE,
        bytes_accessed=(x.size * 4 + B_pad * LANE * 2
                        + w1p.size * 2 + w2p.size * 2 + w3p.size * 2 + bpad.size * 4),
    )

    out = pl.pallas_call(
        thyroid_dnn_kernel,
        out_shape=jax.ShapeDtypeStruct((B_pad, LANE), jnp.bfloat16),
        grid=(num_tiles,),
        in_specs=[
            pl.BlockSpec((TB, D), lambda i: (i, 0)),          # x: streamed per tile
            pl.BlockSpec((D, LANE), lambda i: (0, 0)),        # w1: resident
            pl.BlockSpec((LANE, LANE), lambda i: (0, 0)),     # w2: resident
            pl.BlockSpec((LANE, LANE), lambda i: (0, 0)),     # w3: resident
            pl.BlockSpec((8, LANE), lambda i: (0, 0)),        # fused biases: resident
        ],
        out_specs=pl.BlockSpec((TB, LANE), lambda i: (i, 0)), # lane-dense output slab
        compiler_params=pltpu.CompilerParams(
            dimension_semantics=("parallel",),                # v7x: shard tiles over 2 TCs
        ),
        cost_estimate=cost,
    )(x, w1p, w2p, w3p, bpad)

    return out[:B, :NUM_CLASSES].astype(jnp.float32)


def init_params(input_size, key):
    # Deterministic synthetic init (PyTorch-style fan-in scaling), not a checkpoint load.
    k1, k2, k3, k4, k5, k6 = jax.random.split(key, 6)

    def lin(kw, kb, fan_in, fan_out):
        bound = 1.0 / jnp.sqrt(fan_in)
        w = jax.random.uniform(kw, (fan_in, fan_out), jnp.float32, -bound, bound)
        b = jax.random.uniform(kb, (fan_out,), jnp.float32, -bound, bound)
        return w, b

    w1, b1 = lin(k1, k2, input_size, H1)
    w2, b2 = lin(k3, k4, H1, H2)
    w3, b3 = lin(k5, k6, H2, NUM_CLASSES)
    return w1, b1, w2, b2, w3, b3


def reference_forward(x, params):
    w1, b1, w2, b2, w3, b3 = params
    h1 = jnp.maximum(x @ w1 + b1, 0.0)
    h2 = jnp.maximum(h1 @ w2 + b2, 0.0)
    logits = h2 @ w3 + b3
    return jax.nn.softmax(logits, axis=1)


if __name__ == "__main__":
    input_size = 16
    batch = 8
    key = jax.random.PRNGKey(0)
    kx, kp = jax.random.split(key)
    x = jax.random.normal(kx, (batch, input_size), jnp.float32)

    params = init_params(input_size, kp)
    padded = pad_params(*params)

    out = thyroid_dnn_forward(x, padded)
    out = jax.block_until_ready(out)

    # sanity: shape, softmax rows sum to ~1 (bf16-quantized probs), close to f32 reference
    assert out.shape == (batch, NUM_CLASSES)
    assert jnp.allclose(jnp.sum(out, axis=1), 1.0, atol=1e-2), jnp.sum(out, axis=1)
    ref = reference_forward(x, params)
    assert jnp.allclose(out, ref, atol=2e-2), float(jnp.max(jnp.abs(out - ref)))
    print("KERNEL_OK")
</pallas_src>

<mosaic_0001>
module attributes {stable_mosaic.version = 11 : i64} {
  func.func @thyroid_dnn_kernel(%arg0: i32, %arg1: memref<8x16xf32, #tpu.memory_space<vmem>>, %arg2: memref<16x128xbf16, #tpu.memory_space<vmem>>, %arg3: memref<128x128xbf16, #tpu.memory_space<vmem>>, %arg4: memref<128x128xbf16, #tpu.memory_space<vmem>>, %arg5: memref<8x128xf32, #tpu.memory_space<vmem>>, %arg6: memref<8x128xbf16, #tpu.memory_space<vmem>>) attributes {dimension_semantics = [#tpu.dimension_semantics<parallel>], iteration_bounds = array<i64: 1>, scalar_prefetch = 0 : i64, scratch_operands = 0 : i64, tpu.core_type = #tpu.core_type<tc>, window_params = [{transform_indices = @transform_0, window_bounds = array<i64: 8, 16>}, {pipeline_mode = #tpu.pipeline_mode<synchronous>, transform_indices = @transform_1, window_bounds = array<i64: 16, 128>}, {pipeline_mode = #tpu.pipeline_mode<synchronous>, transform_indices = @transform_2, window_bounds = array<i64: 128, 128>}, {pipeline_mode = #tpu.pipeline_mode<synchronous>, transform_indices = @transform_3, window_bounds = array<i64: 128, 128>}, {pipeline_mode = #tpu.pipeline_mode<synchronous>, transform_indices = @transform_4, window_bounds = array<i64: 8, 128>}, {transform_indices = @transform_5, window_bounds = array<i64: 8, 128>}]} {
    %c0 = arith.constant 0 : index
    %c0_0 = arith.constant 0 : index
    %0 = vector.load %arg1[%c0, %c0_0] : memref<8x16xf32, #tpu.memory_space<vmem>>, vector<8x16xf32>
    %1 = arith.truncf %0 : vector<8x16xf32> to vector<8x16xbf16>
    %c0_1 = arith.constant 0 : index
    %c0_2 = arith.constant 0 : index
    %2 = vector.load %arg5[%c0_1, %c0_2] : memref<8x128xf32, #tpu.memory_space<vmem>>, vector<1x128xf32>
    %c1 = arith.constant 1 : index
    %c0_3 = arith.constant 0 : index
    %3 = vector.load %arg5[%c1, %c0_3] : memref<8x128xf32, #tpu.memory_space<vmem>>, vector<1x128xf32>
    %c2 = arith.constant 2 : index
    %c0_4 = arith.constant 0 : index
    %4 = vector.load %arg5[%c2, %c0_4] : memref<8x128xf32, #tpu.memory_space<vmem>>, vector<1x128xf32>
    %c0_5 = arith.constant 0 : index
    %c0_6 = arith.constant 0 : index
    %5 = vector.load %arg2[%c0_5, %c0_6] : memref<16x128xbf16, #tpu.memory_space<vmem>>, vector<16x128xbf16>
    %cst = arith.constant dense<0.000000e+00> : vector<8x128xf32>
    %6 = tpu.matmul %1, %5, %cst {dimension_numbers = #tpu.dot_dimension_numbers<[1], [0], [0], [1], [0, 0, 1, 1], [], []>} : vector<8x16xbf16>, vector<16x128xbf16>, vector<8x128xf32> -> vector<8x128xf32>
    %7 = vector.broadcast %2 : vector<1x128xf32> to vector<8x128xf32>
    %8 = arith.addf %6, %7 : vector<8x128xf32>
    %cst_7 = arith.constant 0.000000e+00 : f32
    %9 = vector.broadcast %cst_7 : f32 to vector<8x128xf32>
    %10 = arith.maximumf %8, %9 : vector<8x128xf32>
    %11 = arith.truncf %10 : vector<8x128xf32> to vector<8x128xbf16>
    %c0_8 = arith.constant 0 : index
    %c0_9 = arith.constant 0 : index
    %12 = vector.load %arg3[%c0_8, %c0_9] : memref<128x128xbf16, #tpu.memory_space<vmem>>, vector<128x128xbf16>
    %cst_10 = arith.constant dense<0.000000e+00> : vector<8x128xf32>
    %13 = tpu.matmul %11, %12, %cst_10 {dimension_numbers = #tpu.dot_dimension_numbers<[1], [0], [0], [1], [0, 0, 1, 1], [], []>} : vector<8x128xbf16>, vector<128x128xbf16>, vector<8x128xf32> -> vector<8x128xf32>
    %14 = vector.broadcast %3 : vector<1x128xf32> to vector<8x128xf32>
    %15 = arith.addf %13, %14 : vector<8x128xf32>
    %cst_11 = arith.constant 0.000000e+00 : f32
    %16 = vector.broadcast %cst_11 : f32 to vector<8x128xf32>
    %17 = arith.maximumf %15, %16 : vector<8x128xf32>
    %18 = arith.truncf %17 : vector<8x128xf32> to vector<8x128xbf16>
    %c0_12 = arith.constant 0 : index
    %c0_13 = arith.constant 0 : index
    %19 = vector.load %arg4[%c0_12, %c0_13] : memref<128x128xbf16, #tpu.memory_space<vmem>>, vector<128x128xbf16>
    %cst_14 = arith.constant dense<0.000000e+00> : vector<8x128xf32>
    %20 = tpu.matmul %18, %19, %cst_14 {dimension_numbers = #tpu.dot_dimension_numbers<[1], [0], [0], [1], [0, 0, 1, 1], [], []>} : vector<8x128xbf16>, vector<128x128xbf16>, vector<8x128xf32> -> vector<8x128xf32>
    %21 = vector.broadcast %4 : vector<1x128xf32> to vector<8x128xf32>
    %22 = arith.addf %20, %21 : vector<8x128xf32>
    %cst_15 = arith.constant dense<0xFF800000> : vector<8xf32>
    %23 = vector.multi_reduction <maximumf>, %22, %cst_15 [1] : vector<8x128xf32> to vector<8xf32>
    %24 = vector.shape_cast %23 : vector<8xf32> to vector<8x1xf32>
    %25 = vector.broadcast %24 : vector<8x1xf32> to vector<8x128xf32>
    %26 = arith.subf %22, %25 : vector<8x128xf32>
    %27 = math.exp %26 : vector<8x128xf32>
    %cst_16 = arith.constant dense<0.000000e+00> : vector<8xf32>
    %28 = vector.multi_reduction <add>, %27, %cst_16 [1] : vector<8x128xf32> to vector<8xf32>
    %29 = vector.shape_cast %28 : vector<8xf32> to vector<8x1xf32>
    %30 = vector.broadcast %29 : vector<8x1xf32> to vector<8x128xf32>
    %31 = arith.divf %27, %30 : vector<8x128xf32>
    %32 = arith.truncf %31 : vector<8x128xf32> to vector<8x128xbf16>
    %c0_17 = arith.constant 0 : index
    %c0_18 = arith.constant 0 : index
    %33 = vector.load %arg6[%c0_17, %c0_18] : memref<8x128xbf16, #tpu.memory_space<vmem>>, vector<8x128xbf16>
    tpu.vector_store %arg6[%c0_17, %c0_18], %32 {strides = array<i32>} : memref<8x128xbf16, #tpu.memory_space<vmem>>, vector<8x128xbf16>,
    return
  }
  func.func @transform_0(%arg0: i32) -> (i32, i32) {
    %c0_i32 = arith.constant 0 : i32
    %c0_i32_0 = arith.constant 0 : i32
    return %arg0, %c0_i32 : i32, i32
  }
  func.func @transform_1(%arg0: i32) -> (i32, i32) {
    %c0_i32 = arith.constant 0 : i32
    %c0_i32_0 = arith.constant 0 : i32
    %c0_i32_1 = arith.constant 0 : i32
    return %c0_i32, %c0_i32_0 : i32, i32
  }
  func.func @transform_2(%arg0: i32) -> (i32, i32) {
    %c0_i32 = arith.constant 0 : i32
    %c0_i32_0 = arith.constant 0 : i32
    %c0_i32_1 = arith.constant 0 : i32
    return %c0_i32, %c0_i32_0 : i32, i32
  }
  func.func @transform_3(%arg0: i32) -> (i32, i32) {
    %c0_i32 = arith.constant 0 : i32
    %c0_i32_0 = arith.constant 0 : i32
    %c0_i32_1 = arith.constant 0 : i32
    return %c0_i32, %c0_i32_0 : i32, i32
  }
  func.func @transform_4(%arg0: i32) -> (i32, i32) {
    %c0_i32 = arith.constant 0 : i32
    %c0_i32_0 = arith.constant 0 : i32
    %c0_i32_1 = arith.constant 0 : i32
    return %c0_i32, %c0_i32_0 : i32, i32
  }
  func.func @transform_5(%arg0: i32) -> (i32, i32) {
    %c0_i32 = arith.constant 0 : i32
    %c0_i32_0 = arith.constant 0 : i32
    return %arg0, %c0_i32 : i32, i32
  }
}

</mosaic_0001>

<bundles_post_ra>
// kernel: tpu_custom_call.1
= control target key start
LH: loop header
LB: loop body
LE: loop exit
PB: predicated region body
PF: predicated region fallthrough
CT: control target
= control target key end

     0   :  { %10 = vsyncpa [#allocation3], 0  ;;  %s639_s0 = inlined_call_operand.hbm [shape: f32[8,16], index: 0, kind: input, shape index: {}]   ;;  %s640_s1 = inlined_call_operand.hbm [shape: bf16[16,128], index: 1, kind: input, shape index: {}]   ;;  %s641_s2 = inlined_call_operand.hbm [shape: bf16[128,128], index: 2, kind: input, shape index: {}]   ;;  %s642_s3 = inlined_call_operand.hbm [shape: bf16[128,128], index: 3, kind: input, shape index: {}]   ;;  %s643_s4 = inlined_call_operand.hbm [shape: f32[8,128], index: 4, kind: input, shape index: {}]   ;;  %s644_s5 = inlined_call_operand.hbm [shape: bf16[8,128], index: 5, kind: output, shape index: {}]  }
   0x1   :  { %11 = vsyncpa [#allocation6], 0 }
   0x2   :  { %12 = vsyncpa [#allocation9], 0  ;;  %s29_s20 = sshll.u32 %s640_s1, 4  ;;  %s30_s20 = int_to_ptr.hbm [resolvable:$true] %s29_s20 }
   0x3   :  { %13 = vsyncpa [#allocation4], 0  ;;  %s583_s21 = smov [#allocation5]   ;;  %s55_s25 = sshll.u32 %s642_s3, 4  ;;  %s56_s25 = int_to_ptr.hbm [resolvable:$true] %s55_s25 }
   0x4   :  { %s31_s22 = sshll.u32 %s583_s21, 4  ;;  %s584_s26 = smov 64   ;;  %s32_s22 = int_to_ptr.vmem [resolvable:$true] %s31_s22 }
   0x5   :  { %s585_s27 = smov 4   ;;  %s586_s28 = smov [#allocation8]  }
   0x6   :  { %37 = dma.hbm_to_vmem [thread:$0]  %s30_s20, 128, %s32_s22, [#allocation6], %s584_s26, %s584_s26, %s585_s27  }
   0x7   :  { %s57_s29 = sshll.u32 %s586_s28, 4  ;;  %s19_s7 = sshll.u32 %s639_s0, 4  ;;  %s58_s29 = int_to_ptr.vmem [resolvable:$true] %s57_s29  ;;  %s20_s7 = int_to_ptr.hbm [resolvable:$true] %s19_s7 }
   0x8   :  { %63 = dma.hbm_to_vmem [thread:$0]  %s56_s25, 1024, %s58_s29, [#allocation9], %s584_s26, %s584_s26, %s585_s27  }
   0x9   :  { %s42_s9 = sshll.u32 %s641_s2, 4  ;;  %s587_s10 = smov [#allocation2]   ;;  %s43_s9 = int_to_ptr.hbm [resolvable:$true] %s42_s9 }
   0xa   :  { %s21_s11 = sshll.u32 %s587_s10, 4  ;;  %s588_s3 = smov [#allocation7]   ;;  %s22_s11 = int_to_ptr.vmem [resolvable:$true] %s21_s11 }
   0xb   :  { %24 = dma.hbm_to_vmem [thread:$0]  %s20_s7, 128, %s22_s11, [#allocation3]  }
   0xc   :  { %s44_s12 = sshll.u32 %s588_s3, 4  ;;  %s69_s15 = sshll.u32 %s643_s4, 4  ;;  %s45_s12 = int_to_ptr.vmem [resolvable:$true] %s44_s12  ;;  %s70_s15 = int_to_ptr.hbm [resolvable:$true] %s69_s15 }
   0xd   :  { %50 = dma.hbm_to_vmem [thread:$0]  %s43_s9, 1024, %s45_s12, [#allocation6], %s584_s26, %s584_s26, %s585_s27  }
   0xe   :  { %s589_s0 = smov [#allocation10]  }
   0xf   :  { %s71_s16 = sshll.u32 %s589_s0, 4  ;;  %s72_s16 = int_to_ptr.vmem [resolvable:$true] %s71_s16 }
  0x10   :  { %74 = dma.hbm_to_vmem [thread:$0]  %s70_s15, 128, %s72_s16, [#allocation9]  }
  0x11   :  { %575 = dma.done.wait [#allocation3], 128  }
  0x12   :  { %576 = vsyncadd [#allocation3], 4294967168 }
  0x13   :  { %577 = dma.done.wait [#allocation6], 1152  }
  0x14   :  { %578 = vsyncadd [#allocation6], 4294966144 }
  0x15   :  { %579 = dma.done.wait [#allocation9], 1152  }
  0x16   :  { %580 = vsyncadd [#allocation9], 4294966144  ;;  %v399_v0 = vld [vmem:[#allocation5] sm:$0xff]  ;;  %v96_v1 = vld [vmem:[#allocation2] sm:$0xff]  ;;  %vm110_vm0 = vcmask 130048   ;;  %s590_s2 = smov [#allocation11]  }
  0x17   :  { %v407_v2 = vld [vmem:[#allocation7 + $0x38] sm:$0xff]  ;;  %v97_v3 = vpack.c.bf16 %v96_v1, %v96_v1  ;;  %121 = vmatpush.bf16.msra.mxu0 %v399_v0  ;;  %v406_v4 = vld [vmem:[#allocation7 + $0x30] sm:$0xff]  ;;  %v405_v5 = vld [vmem:[#allocation7 + $0x28] sm:$0xff]  ;;  %s316_s4 = sshll.u32 %s590_s2, 4  ;;  %s318_s19 = sshll.u32 %s644_s5, 4  ;;  %s317_s4 = int_to_ptr.vmem [resolvable:$true] %s316_s4  ;;  %s319_s19 = int_to_ptr.hbm [resolvable:$true] %s318_s19 }
  0x18   :  { %194 = vmatpush.bf16.msra.mxu1 %v407_v2  ;;  %v404_v6 = vld [vmem:[#allocation7 + $0x20] sm:$0xff]  ;;  %v403_v7 = vld [vmem:[#allocation7 + $0x18] sm:$0xff]  ;;  %v402_v8 = vld [vmem:[#allocation7 + $0x10] sm:$0xff] }
  0x19   :  { %v401_v9 = vld [vmem:[#allocation7 + $0x8] sm:$0xff]  ;;  %v400_v10 = vld [vmem:[#allocation7] sm:$0xff]  ;;  %v415_v11 = vld [vmem:[#allocation8 + $0x38] sm:$0xff] }
  0x1a   :  { %334 = vmatmul.msk.bf16.vlgmr.msra.gmra.mxu0 %vm110_vm0, %v97_v3  ;;  %274 = vmatpush.bf16.msra.mxu2 %v415_v11  ;;  %v414_v12 = vld [vmem:[#allocation8 + $0x30] sm:$0xff]  ;;  %v413_v13 = vld [vmem:[#allocation8 + $0x28] sm:$0xff]  ;;  %v412_v14 = vld [vmem:[#allocation8 + $0x20] sm:$0xff] }
  0x1b   :  { %v411_v15 = vld [vmem:[#allocation8 + $0x18] sm:$0xff]  ;;  %v410_v16 = vld [vmem:[#allocation8 + $0x10] sm:$0xff]  ;;  %v424_v17 = vld [vmem:[#allocation10] ss:$0 sm:$0xff] }
  0x1c   :  { %195 = vmatpush.bf16.msra.mxu1 %v406_v4  ;;  %v409_v23 = vld [vmem:[#allocation8 + $0x8] sm:$0xff]  ;;  %v408_v24 = vld [vmem:[#allocation8] sm:$0xff] }
  0x1d   :  { %v425_v25 = vld [vmem:[#allocation10 + $0x1] ss:$0 sm:$0xff]  ;;  %v426_v31 = vld [vmem:[#allocation10 + $0x2] ss:$0 sm:$0xff] }
  0x1e   :  { %275 = vmatpush.bf16.msra.mxu2 %v414_v12 }
  0x20   :  { %196 = vmatpush.bf16.msra.mxu1 %v405_v5 }
  0x22   :  { %276 = vmatpush.bf16.msra.mxu2 %v413_v13 }
  0x24   :  { %197 = vmatpush.bf16.msra.mxu1 %v404_v6 }
  0x26   :  { %277 = vmatpush.bf16.msra.mxu2 %v412_v14 }
  0x28   :  { %198 = vmatpush.bf16.msra.mxu1 %v403_v7 }
  0x2a   :  { %278 = vmatpush.bf16.msra.mxu2 %v411_v15 }
  0x2c   :  { %199 = vmatpush.bf16.msra.mxu1 %v402_v8 }
  0x2e   :  { %279 = vmatpush.bf16.msra.mxu2 %v410_v16 }
  0x30   :  { %200 = vmatpush.bf16.msra.mxu1 %v401_v9 }
  0x32   :  { %280 = vmatpush.bf16.msra.mxu2 %v409_v23 }
  0x34   :  { %201 = vmatpush.bf16.msra.mxu1 %v400_v10 }
  0x36   :  { %281 = vmatpush.bf16.msra.mxu2 %v408_v24 }
  0x97   :  { %v123_v18 = vpop.f32.mrf.mxu0 }
  0x98   :  { %v124_v19 = vadd.f32 %v424_v17, %v123_v18 }
  0x9a   :  { %v127_v20 = vmax.f32 %v124_v19, 0.0 }
  0x9c   :  { %v128_v21 = vpack.c.bf16 %v127_v20, %v127_v20 }
  0x9e   :  { %202 = vmatmul.bf16.vlgmr.msra.gmra.mxu1 %v128_v21 }
  0x9f   :  { %v125_v22 = vpop.f32.mrf.mxu0 }
 0x11b   :  { %v203_v26 = vpop.f32.mrf.mxu1 }
 0x11c   :  { %v204_v27 = vadd.f32 %v425_v25, %v203_v26 }
 0x11e   :  { %v207_v28 = vmax.f32 %v204_v27, 0.0 }
 0x120   :  { %v208_v29 = vpack.c.bf16 %v207_v28, %v207_v28 }
 0x122   :  { %282 = vmatmul.bf16.vlgmr.msra.gmra.mxu2 %v208_v29 }
 0x123   :  { %v205_v30 = vpop.f32.mrf.mxu1 }
 0x1a5   :  { %v283_v32 = vpop.f32.mrf.mxu2 }
 0x1a6   :  { %v284_v33 = vadd.f32 %v426_v31, %v283_v32 }
 0x1a8   :  { %287 = vmax.xlane.f32.xlu0 %v284_v33 }
 0x1ad   :  { %v285_v34 = vpop.f32.mrf.mxu2 }
 0x21b   :  { %v288_v35 = vpop.xlane.xlu0 %287 }
 0x21c   :  { %v289_v36 = vsub.f32 %v284_v33, %v288_v35 }
 0x21e   :  { %v290_v37 = vmul.f32 1.442695, %v289_v36 }
 0x220   :  { %427 = vpow2.f32 %v290_v37 }
 0x226   :  { %v428_v38 = vpop.eup %427 }
 0x227   :  { %292 = vadd.xlane.f32.xlu0 %v428_v38 }
 0x29a   :  { %v293_v39 = vpop.xlane.xlu0 %292 }
 0x29b   :  { %429 = vrcp.f32 %v293_v39  ;;  %v305_v43 = vand.u32 2147483648, %v293_v39  ;;  %v303_v45 = vand.u32 2147483647, %v293_v39  ;;  %vm299_vm2 = vweird.f32 %v293_v39 }
 0x29d   :  { %v306_v47 = vor.u32 1.1754944e-38, %v305_v43  ;;  %vm304_vm4 = vcmp.eq.f32.partialorder %v303_v45, 8.507059e+37 }
 0x2a1   :  { %v430_v40 = vpop.eup %429 }
 0x2a2   :  { %v295_v41 = vmul.f32 %v430_v40, %v293_v39  ;;  %vm300_vm1 = vweird.f32 %v430_v40 }
 0x2a3   :  { %vm301_vm3 = vmor %vm299_vm2, %vm300_vm1 }
 0x2a4   :  { %v296_v42 = vsub.f32 1.0, %v295_v41 }
 0x2a6   :  { %v297_v44 = vmul.f32 %v430_v40, %v296_v42 }
 0x2a8   :  { %v298_v46 = vadd.f32 %v430_v40, %v297_v44 }
 0x2aa   :  { %v302_v48 = vsel %vm301_vm3, %v430_v40, %v298_v46 }
 0x2ab   :  { %v307_v49 = vsel %vm304_vm4, %v306_v47, %v302_v48 }
 0x2ac   :  { %v308_v50 = vmul.f32 %v428_v38, %v307_v49 }
 0x2ae   :  { %v309_v51 = vpack.c.bf16 %v308_v50, %v308_v50 }
 0x2b0   :  { %310 = vst [vmem:[#allocation11] sm:$0xf] %v309_v51 }
 0x2b1   :  { %321 = dma.vmem_to_hbm [thread:$0]  %s317_s4, 64, %s319_s19, [#allocation4]  }
 0x2b2   :  { %581 = dma.done.wait [#allocation4], 64  }
 0x2b3   :  { %582 = vsyncadd [#allocation4], 4294967232 }
 0x2b4   :  { %326 = vsyncpa [#allocation3], 1 }
 0x2b5   :  { %327 = vsyncpa [#allocation6], 1 }
 0x2b6   :  { %328 = vsyncpa [#allocation9], 1 }
 0x2b7   :  { %329 = vsyncpa [#allocation4], 1 }

</bundles_post_ra>
